<compile_context>
chip_gen: v6e
topology: v6e:2x2x1
jax: 0.10.0
libtpu: 0.0.40
codegen_flags: <defaults>
</compile_context>

<pallas_src>
import numpy as np
import jax
import jax.numpy as jnp
from jax import lax
from jax.experimental import pallas as pl
from jax.experimental.pallas import tpu as pltpu


# ------------------------------- Pallas kernel ------------------------------

def _net_fused_kernel(x_ref, o_ref):
    """Whole forward in one pass.

    x_ref: (d, n) f32 -- input.squeeze(0); the n columns are the vectors.
    o_ref: (d, 1) f32 -- mean over the kept ("non-attacked") columns.
    """
    x = x_ref[...]
    n = x.shape[1]
    f32 = jnp.float32

    # ---- 1) cosine-similarity matrix of the n columns (MXU) ----
    nsq = jnp.sum(x * x, axis=0, keepdims=True)                  # (1, n)
    xn = x * lax.rsqrt(nsq + 1e-12)                              # EUP rsqrt
    # Contract axis 0 of both operands (x^T x) -> no transpose needed.
    a = lax.dot_general(xn, xn, (((0,), (0,)), ((), ())),
                        preferred_element_type=f32)              # (n, n)

    # ---- 2) attacked-column selection (fun() logic, on device) ----
    # Leaked loop variable: i == n-1, so only row n-1 and its mean matter.
    row = a[n - 1:n, :]                                          # (1, n) == a[i]
    m = jnp.sum(row, axis=1, keepdims=True) * (1.0 / n)          # np.mean(a[i])
    col_ids = lax.broadcasted_iota(jnp.int32, (1, n), 1)
    row_lt_m = (row < m).astype(f32)                             # hoisted, reused

    # Sequential outer loop over j (earlier memberships feed later conditions);
    # n is a compile-time constant -> static unroll (switch to lax.fori_loop
    # with dynamic slices only if n grows large).
    mask = jnp.zeros((1, n), f32)                                # set(att) as 0/1
    for j in range(n):
        # if a[i][j] < 0 or j in att:
        cond = jnp.maximum((row[:, j:j + 1] < 0.0).astype(f32),
                           mask[:, j:j + 1])                     # (1, 1) in {0,1}
        # att.append(j); add every y with a[j][y] >= m and a[i][y] < m
        add = jnp.maximum((col_ids == j).astype(f32),
                          (a[j:j + 1, :] >= m).astype(f32) * row_lt_m)
        mask = jnp.maximum(mask, cond * add)

    count = jnp.sum(mask, axis=1, keepdims=True)                 # len(set(att))
    flip = (count > (n * 0.5)).astype(f32)                       # > n / 2
    keep = flip * mask + (1.0 - flip) * (1.0 - mask)             # kept columns
    k = jnp.sum(keep, axis=1, keepdims=True)                     # >= 1 for n >= 1
    w = keep / k                                                 # (1, n)

    # ---- 3) mean over kept columns on the VPU (broadcast-mul + lane reduce) ----
    o_ref[...] = jnp.sum(x * w, axis=1, keepdims=True)           # (d, 1)


# -------------------------------- Net.forward -------------------------------

@jax.jit
def net_forward(x):
    """x: (1, d, n) float32 -> (d, 1) float32 (same as the torch module)."""
    x2d = x[0].astype(jnp.float32)           # input.squeeze(0) -> (d, n); fused in jit
    d, n = x2d.shape
    # TODO(synk): the original fun() also does a host-side `print(att)`; that
    #             side effect is dropped since the selection now runs on-device.
    return pl.pallas_call(
        _net_fused_kernel,
        out_shape=jax.ShapeDtypeStruct((d, 1), jnp.float32),
        grid=(1,),
        in_specs=[pl.BlockSpec((d, n), lambda i: (0, 0))],
        out_specs=pl.BlockSpec((d, 1), lambda i: (0, 0)),
        compiler_params=pltpu.CompilerParams(
            dimension_semantics=("arbitrary",)),
    )(x2d)


# ------------------------- host-side numpy reference ------------------------

def _reference_forward(x_np):
    """Pure-numpy re-statement of fun() with the same cosine definition of C."""
    x2d = np.asarray(x_np[0], np.float32)                        # (d, n)
    d, n = x2d.shape
    nsq = np.sum(x2d * x2d, axis=0, keepdims=True)
    xn = x2d / np.sqrt(nsq + 1e-12)
    a = xn.T @ xn
    mx = -1 * n
    ind = -1
    att = []
    for i in range(n):
        if np.sum(a[i]) > mx:
            mx = np.sum(a[i])
            ind = i
    for j in range(len(a[i])):                                   # leaked i == n-1
        if a[i][j] < 0 or j in att:
            att.append(j)
            t = list(np.where(a[j] >= np.mean(a[i]))[0])
            for y in np.array(t):
                if a[i][y] < np.mean(a[i]) and y not in att:
                    att.append(y)
    if len(set(att)) > n / 2:
        att = [i for i in range(n) if i not in set(att)]
    keep = [i for i in range(n) if i not in att]
    return np.mean(x2d[:, keep], axis=1, keepdims=True)          # (d, 1)


if __name__ == "__main__":
    key = jax.random.PRNGKey(0)
    d, n = 32, 8                                  # vector_dim=32, n=8 columns
    x = jax.random.normal(key, (1, d, n), dtype=jnp.float32)

    out = jax.block_until_ready(net_forward(x))

    assert out.shape == (d, 1) and out.dtype == jnp.float32
    assert bool(jnp.all(jnp.isfinite(out)))
    ref = _reference_forward(np.asarray(x))
    np.testing.assert_allclose(np.asarray(out), ref, rtol=1e-5, atol=1e-5)
    print("KERNEL_OK")
</pallas_src>

<mosaic_0001>
module attributes {stable_mosaic.version = 11 : i64} {
  func.func @_net_fused_kernel(%arg0: i32, %arg1: memref<32x8xf32, #tpu.memory_space<vmem>>, %arg2: memref<32x1xf32, #tpu.memory_space<vmem>>) attributes {dimension_semantics = [#tpu.dimension_semantics<arbitrary>], iteration_bounds = array<i64: 1>, scalar_prefetch = 0 : i64, scratch_operands = 0 : i64, tpu.core_type = #tpu.core_type<tc>, window_params = [{pipeline_mode = #tpu.pipeline_mode<synchronous>, transform_indices = @transform_0, window_bounds = array<i64: 32, 8>}, {pipeline_mode = #tpu.pipeline_mode<synchronous>, transform_indices = @transform_1, window_bounds = array<i64: 32, 1>}]} {
    %c0 = arith.constant 0 : index
    %c0_0 = arith.constant 0 : index
    %0 = vector.load %arg1[%c0, %c0_0] : memref<32x8xf32, #tpu.memory_space<vmem>>, vector<32x8xf32>
    %1 = arith.mulf %0, %0 : vector<32x8xf32>
    %cst = arith.constant dense<0.000000e+00> : vector<8xf32>
    %2 = vector.multi_reduction <add>, %1, %cst [0] : vector<32x8xf32> to vector<8xf32>
    %3 = vector.shape_cast %2 : vector<8xf32> to vector<1x8xf32>
    %cst_1 = arith.constant 9.99999996E-13 : f32
    %4 = vector.broadcast %cst_1 : f32 to vector<1x8xf32>
    %5 = arith.addf %3, %4 : vector<1x8xf32>
    %6 = math.rsqrt %5 : vector<1x8xf32>
    %7 = vector.broadcast %6 : vector<1x8xf32> to vector<32x8xf32>
    %8 = arith.mulf %0, %7 : vector<32x8xf32>
    %cst_2 = arith.constant dense<0.000000e+00> : vector<8x8xf32>
    %9 = tpu.matmul %8, %8, %cst_2 {dimension_numbers = #tpu.dot_dimension_numbers<[0], [0], [1], [1], [0, 1, 1, 1], [], []>} : vector<32x8xf32>, vector<32x8xf32>, vector<8x8xf32> -> vector<8x8xf32>
    %10 = vector.extract_strided_slice %9 {offsets = [7, 0], sizes = [1, 8], strides = [1, 1]} : vector<8x8xf32> to vector<1x8xf32>
    %cst_3 = arith.constant dense<0.000000e+00> : vector<1xf32>
    %11 = vector.multi_reduction <add>, %10, %cst_3 [1] : vector<1x8xf32> to vector<1xf32>
    %12 = vector.shape_cast %11 : vector<1xf32> to vector<1x1xf32>
    %cst_4 = arith.constant 1.250000e-01 : f32
    %13 = vector.broadcast %cst_4 : f32 to vector<1x1xf32>
    %14 = arith.mulf %12, %13 : vector<1x1xf32>
    %15 = tpu.iota {dimensions = array<i32: 1>} : vector<1x8xi32>
    %16 = vector.broadcast %14 : vector<1x1xf32> to vector<1x8xf32>
    %17 = arith.cmpf olt, %10, %16 : vector<1x8xf32>
    %18 = arith.extui %17 : vector<1x8xi1> to vector<1x8xi32>
    %19 = arith.sitofp %18 : vector<1x8xi32> to vector<1x8xf32>
    %cst_5 = arith.constant 0.000000e+00 : f32
    %20 = vector.broadcast %cst_5 : f32 to vector<1x8xf32>
    %21 = vector.extract_strided_slice %10 {offsets = [0, 0], sizes = [1, 1], strides = [1, 1]} : vector<1x8xf32> to vector<1x1xf32>
    %cst_6 = arith.constant 0.000000e+00 : f32
    %22 = vector.broadcast %cst_6 : f32 to vector<1x1xf32>
    %23 = arith.cmpf olt, %21, %22 : vector<1x1xf32>
    %24 = arith.extui %23 : vector<1x1xi1> to vector<1x1xi32>
    %25 = arith.sitofp %24 : vector<1x1xi32> to vector<1x1xf32>
    %26 = vector.extract_strided_slice %20 {offsets = [0, 0], sizes = [1, 1], strides = [1, 1]} : vector<1x8xf32> to vector<1x1xf32>
    %27 = arith.maximumf %25, %26 : vector<1x1xf32>
    %c0_i32 = arith.constant 0 : i32
    %28 = vector.broadcast %c0_i32 : i32 to vector<1x8xi32>
    %29 = arith.cmpi eq, %15, %28 : vector<1x8xi32>
    %30 = arith.extui %29 : vector<1x8xi1> to vector<1x8xi32>
    %31 = arith.sitofp %30 : vector<1x8xi32> to vector<1x8xf32>
    %32 = vector.extract_strided_slice %9 {offsets = [0, 0], sizes = [1, 8], strides = [1, 1]} : vector<8x8xf32> to vector<1x8xf32>
    %33 = vector.broadcast %14 : vector<1x1xf32> to vector<1x8xf32>
    %34 = arith.cmpf oge, %32, %33 : vector<1x8xf32>
    %35 = arith.extui %34 : vector<1x8xi1> to vector<1x8xi32>
    %36 = arith.sitofp %35 : vector<1x8xi32> to vector<1x8xf32>
    %37 = arith.mulf %36, %19 : vector<1x8xf32>
    %38 = arith.maximumf %31, %37 : vector<1x8xf32>
    %39 = vector.broadcast %27 : vector<1x1xf32> to vector<1x8xf32>
    %40 = arith.mulf %39, %38 : vector<1x8xf32>
    %41 = arith.maximumf %20, %40 : vector<1x8xf32>
    %42 = vector.extract_strided_slice %10 {offsets = [0, 1], sizes = [1, 1], strides = [1, 1]} : vector<1x8xf32> to vector<1x1xf32>
    %cst_7 = arith.constant 0.000000e+00 : f32
    %43 = vector.broadcast %cst_7 : f32 to vector<1x1xf32>
    %44 = arith.cmpf olt, %42, %43 : vector<1x1xf32>
    %45 = arith.extui %44 : vector<1x1xi1> to vector<1x1xi32>
    %46 = arith.sitofp %45 : vector<1x1xi32> to vector<1x1xf32>
    %47 = vector.extract_strided_slice %41 {offsets = [0, 1], sizes = [1, 1], strides = [1, 1]} : vector<1x8xf32> to vector<1x1xf32>
    %48 = arith.maximumf %46, %47 : vector<1x1xf32>
    %c1_i32 = arith.constant 1 : i32
    %49 = vector.broadcast %c1_i32 : i32 to vector<1x8xi32>
    %50 = arith.cmpi eq, %15, %49 : vector<1x8xi32>
    %51 = arith.extui %50 : vector<1x8xi1> to vector<1x8xi32>
    %52 = arith.sitofp %51 : vector<1x8xi32> to vector<1x8xf32>
    %53 = vector.extract_strided_slice %9 {offsets = [1, 0], sizes = [1, 8], strides = [1, 1]} : vector<8x8xf32> to vector<1x8xf32>
    %54 = vector.broadcast %14 : vector<1x1xf32> to vector<1x8xf32>
    %55 = arith.cmpf oge, %53, %54 : vector<1x8xf32>
    %56 = arith.extui %55 : vector<1x8xi1> to vector<1x8xi32>
    %57 = arith.sitofp %56 : vector<1x8xi32> to vector<1x8xf32>
    %58 = arith.mulf %57, %19 : vector<1x8xf32>
    %59 = arith.maximumf %52, %58 : vector<1x8xf32>
    %60 = vector.broadcast %48 : vector<1x1xf32> to vector<1x8xf32>
    %61 = arith.mulf %60, %59 : vector<1x8xf32>
    %62 = arith.maximumf %41, %61 : vector<1x8xf32>
    %63 = vector.extract_strided_slice %10 {offsets = [0, 2], sizes = [1, 1], strides = [1, 1]} : vector<1x8xf32> to vector<1x1xf32>
    %cst_8 = arith.constant 0.000000e+00 : f32
    %64 = vector.broadcast %cst_8 : f32 to vector<1x1xf32>
    %65 = arith.cmpf olt, %63, %64 : vector<1x1xf32>
    %66 = arith.extui %65 : vector<1x1xi1> to vector<1x1xi32>
    %67 = arith.sitofp %66 : vector<1x1xi32> to vector<1x1xf32>
    %68 = vector.extract_strided_slice %62 {offsets = [0, 2], sizes = [1, 1], strides = [1, 1]} : vector<1x8xf32> to vector<1x1xf32>
    %69 = arith.maximumf %67, %68 : vector<1x1xf32>
    %c2_i32 = arith.constant 2 : i32
    %70 = vector.broadcast %c2_i32 : i32 to vector<1x8xi32>
    %71 = arith.cmpi eq, %15, %70 : vector<1x8xi32>
    %72 = arith.extui %71 : vector<1x8xi1> to vector<1x8xi32>
    %73 = arith.sitofp %72 : vector<1x8xi32> to vector<1x8xf32>
    %74 = vector.extract_strided_slice %9 {offsets = [2, 0], sizes = [1, 8], strides = [1, 1]} : vector<8x8xf32> to vector<1x8xf32>
    %75 = vector.broadcast %14 : vector<1x1xf32> to vector<1x8xf32>
    %76 = arith.cmpf oge, %74, %75 : vector<1x8xf32>
    %77 = arith.extui %76 : vector<1x8xi1> to vector<1x8xi32>
    %78 = arith.sitofp %77 : vector<1x8xi32> to vector<1x8xf32>
    %79 = arith.mulf %78, %19 : vector<1x8xf32>
    %80 = arith.maximumf %73, %79 : vector<1x8xf32>
    %81 = vector.broadcast %69 : vector<1x1xf32> to vector<1x8xf32>
    %82 = arith.mulf %81, %80 : vector<1x8xf32>
    %83 = arith.maximumf %62, %82 : vector<1x8xf32>
    %84 = vector.extract_strided_slice %10 {offsets = [0, 3], sizes = [1, 1], strides = [1, 1]} : vector<1x8xf32> to vector<1x1xf32>
    %cst_9 = arith.constant 0.000000e+00 : f32
    %85 = vector.broadcast %cst_9 : f32 to vector<1x1xf32>
    %86 = arith.cmpf olt, %84, %85 : vector<1x1xf32>
    %87 = arith.extui %86 : vector<1x1xi1> to vector<1x1xi32>
    %88 = arith.sitofp %87 : vector<1x1xi32> to vector<1x1xf32>
    %89 = vector.extract_strided_slice %83 {offsets = [0, 3], sizes = [1, 1], strides = [1, 1]} : vector<1x8xf32> to vector<1x1xf32>
    %90 = arith.maximumf %88, %89 : vector<1x1xf32>
    %c3_i32 = arith.constant 3 : i32
    %91 = vector.broadcast %c3_i32 : i32 to vector<1x8xi32>
    %92 = arith.cmpi eq, %15, %91 : vector<1x8xi32>
    %93 = arith.extui %92 : vector<1x8xi1> to vector<1x8xi32>
    %94 = arith.sitofp %93 : vector<1x8xi32> to vector<1x8xf32>
    %95 = vector.extract_strided_slice %9 {offsets = [3, 0], sizes = [1, 8], strides = [1, 1]} : vector<8x8xf32> to vector<1x8xf32>
    %96 = vector.broadcast %14 : vector<1x1xf32> to vector<1x8xf32>
    %97 = arith.cmpf oge, %95, %96 : vector<1x8xf32>
    %98 = arith.extui %97 : vector<1x8xi1> to vector<1x8xi32>
    %99 = arith.sitofp %98 : vector<1x8xi32> to vector<1x8xf32>
    %100 = arith.mulf %99, %19 : vector<1x8xf32>
    %101 = arith.maximumf %94, %100 : vector<1x8xf32>
    %102 = vector.broadcast %90 : vector<1x1xf32> to vector<1x8xf32>
    %103 = arith.mulf %102, %101 : vector<1x8xf32>
    %104 = arith.maximumf %83, %103 : vector<1x8xf32>
    %105 = vector.extract_strided_slice %10 {offsets = [0, 4], sizes = [1, 1], strides = [1, 1]} : vector<1x8xf32> to vector<1x1xf32>
    %cst_10 = arith.constant 0.000000e+00 : f32
    %106 = vector.broadcast %cst_10 : f32 to vector<1x1xf32>
    %107 = arith.cmpf olt, %105, %106 : vector<1x1xf32>
    %108 = arith.extui %107 : vector<1x1xi1> to vector<1x1xi32>
    %109 = arith.sitofp %108 : vector<1x1xi32> to vector<1x1xf32>
    %110 = vector.extract_strided_slice %104 {offsets = [0, 4], sizes = [1, 1], strides = [1, 1]} : vector<1x8xf32> to vector<1x1xf32>
    %111 = arith.maximumf %109, %110 : vector<1x1xf32>
    %c4_i32 = arith.constant 4 : i32
    %112 = vector.broadcast %c4_i32 : i32 to vector<1x8xi32>
    %113 = arith.cmpi eq, %15, %112 : vector<1x8xi32>
    %114 = arith.extui %113 : vector<1x8xi1> to vector<1x8xi32>
    %115 = arith.sitofp %114 : vector<1x8xi32> to vector<1x8xf32>
    %116 = vector.extract_strided_slice %9 {offsets = [4, 0], sizes = [1, 8], strides = [1, 1]} : vector<8x8xf32> to vector<1x8xf32>
    %117 = vector.broadcast %14 : vector<1x1xf32> to vector<1x8xf32>
    %118 = arith.cmpf oge, %116, %117 : vector<1x8xf32>
    %119 = arith.extui %118 : vector<1x8xi1> to vector<1x8xi32>
    %120 = arith.sitofp %119 : vector<1x8xi32> to vector<1x8xf32>
    %121 = arith.mulf %120, %19 : vector<1x8xf32>
    %122 = arith.maximumf %115, %121 : vector<1x8xf32>
    %123 = vector.broadcast %111 : vector<1x1xf32> to vector<1x8xf32>
    %124 = arith.mulf %123, %122 : vector<1x8xf32>
    %125 = arith.maximumf %104, %124 : vector<1x8xf32>
    %126 = vector.extract_strided_slice %10 {offsets = [0, 5], sizes = [1, 1], strides = [1, 1]} : vector<1x8xf32> to vector<1x1xf32>
    %cst_11 = arith.constant 0.000000e+00 : f32
    %127 = vector.broadcast %cst_11 : f32 to vector<1x1xf32>
    %128 = arith.cmpf olt, %126, %127 : vector<1x1xf32>
    %129 = arith.extui %128 : vector<1x1xi1> to vector<1x1xi32>
    %130 = arith.sitofp %129 : vector<1x1xi32> to vector<1x1xf32>
    %131 = vector.extract_strided_slice %125 {offsets = [0, 5], sizes = [1, 1], strides = [1, 1]} : vector<1x8xf32> to vector<1x1xf32>
    %132 = arith.maximumf %130, %131 : vector<1x1xf32>
    %c5_i32 = arith.constant 5 : i32
    %133 = vector.broadcast %c5_i32 : i32 to vector<1x8xi32>
    %134 = arith.cmpi eq, %15, %133 : vector<1x8xi32>
    %135 = arith.extui %134 : vector<1x8xi1> to vector<1x8xi32>
    %136 = arith.sitofp %135 : vector<1x8xi32> to vector<1x8xf32>
    %137 = vector.extract_strided_slice %9 {offsets = [5, 0], sizes = [1, 8], strides = [1, 1]} : vector<8x8xf32> to vector<1x8xf32>
    %138 = vector.broadcast %14 : vector<1x1xf32> to vector<1x8xf32>
    %139 = arith.cmpf oge, %137, %138 : vector<1x8xf32>
    %140 = arith.extui %139 : vector<1x8xi1> to vector<1x8xi32>
    %141 = arith.sitofp %140 : vector<1x8xi32> to vector<1x8xf32>
    %142 = arith.mulf %141, %19 : vector<1x8xf32>
    %143 = arith.maximumf %136, %142 : vector<1x8xf32>
    %144 = vector.broadcast %132 : vector<1x1xf32> to vector<1x8xf32>
    %145 = arith.mulf %144, %143 : vector<1x8xf32>
    %146 = arith.maximumf %125, %145 : vector<1x8xf32>
    %147 = vector.extract_strided_slice %10 {offsets = [0, 6], sizes = [1, 1], strides = [1, 1]} : vector<1x8xf32> to vector<1x1xf32>
    %cst_12 = arith.constant 0.000000e+00 : f32
    %148 = vector.broadcast %cst_12 : f32 to vector<1x1xf32>
    %149 = arith.cmpf olt, %147, %148 : vector<1x1xf32>
    %150 = arith.extui %149 : vector<1x1xi1> to vector<1x1xi32>
    %151 = arith.sitofp %150 : vector<1x1xi32> to vector<1x1xf32>
    %152 = vector.extract_strided_slice %146 {offsets = [0, 6], sizes = [1, 1], strides = [1, 1]} : vector<1x8xf32> to vector<1x1xf32>
    %153 = arith.maximumf %151, %152 : vector<1x1xf32>
    %c6_i32 = arith.constant 6 : i32
    %154 = vector.broadcast %c6_i32 : i32 to vector<1x8xi32>
    %155 = arith.cmpi eq, %15, %154 : vector<1x8xi32>
    %156 = arith.extui %155 : vector<1x8xi1> to vector<1x8xi32>
    %157 = arith.sitofp %156 : vector<1x8xi32> to vector<1x8xf32>
    %158 = vector.extract_strided_slice %9 {offsets = [6, 0], sizes = [1, 8], strides = [1, 1]} : vector<8x8xf32> to vector<1x8xf32>
    %159 = vector.broadcast %14 : vector<1x1xf32> to vector<1x8xf32>
    %160 = arith.cmpf oge, %158, %159 : vector<1x8xf32>
    %161 = arith.extui %160 : vector<1x8xi1> to vector<1x8xi32>
    %162 = arith.sitofp %161 : vector<1x8xi32> to vector<1x8xf32>
    %163 = arith.mulf %162, %19 : vector<1x8xf32>
    %164 = arith.maximumf %157, %163 : vector<1x8xf32>
    %165 = vector.broadcast %153 : vector<1x1xf32> to vector<1x8xf32>
    %166 = arith.mulf %165, %164 : vector<1x8xf32>
    %167 = arith.maximumf %146, %166 : vector<1x8xf32>
    %168 = vector.extract_strided_slice %10 {offsets = [0, 7], sizes = [1, 1], strides = [1, 1]} : vector<1x8xf32> to vector<1x1xf32>
    %cst_13 = arith.constant 0.000000e+00 : f32
    %169 = vector.broadcast %cst_13 : f32 to vector<1x1xf32>
    %170 = arith.cmpf olt, %168, %169 : vector<1x1xf32>
    %171 = arith.extui %170 : vector<1x1xi1> to vector<1x1xi32>
    %172 = arith.sitofp %171 : vector<1x1xi32> to vector<1x1xf32>
    %173 = vector.extract_strided_slice %167 {offsets = [0, 7], sizes = [1, 1], strides = [1, 1]} : vector<1x8xf32> to vector<1x1xf32>
    %174 = arith.maximumf %172, %173 : vector<1x1xf32>
    %c7_i32 = arith.constant 7 : i32
    %175 = vector.broadcast %c7_i32 : i32 to vector<1x8xi32>
    %176 = arith.cmpi eq, %15, %175 : vector<1x8xi32>
    %177 = arith.extui %176 : vector<1x8xi1> to vector<1x8xi32>
    %178 = arith.sitofp %177 : vector<1x8xi32> to vector<1x8xf32>
    %179 = vector.extract_strided_slice %9 {offsets = [7, 0], sizes = [1, 8], strides = [1, 1]} : vector<8x8xf32> to vector<1x8xf32>
    %180 = vector.broadcast %14 : vector<1x1xf32> to vector<1x8xf32>
    %181 = arith.cmpf oge, %179, %180 : vector<1x8xf32>
    %182 = arith.extui %181 : vector<1x8xi1> to vector<1x8xi32>
    %183 = arith.sitofp %182 : vector<1x8xi32> to vector<1x8xf32>
    %184 = arith.mulf %183, %19 : vector<1x8xf32>
    %185 = arith.maximumf %178, %184 : vector<1x8xf32>
    %186 = vector.broadcast %174 : vector<1x1xf32> to vector<1x8xf32>
    %187 = arith.mulf %186, %185 : vector<1x8xf32>
    %188 = arith.maximumf %167, %187 : vector<1x8xf32>
    %cst_14 = arith.constant dense<0.000000e+00> : vector<1xf32>
    %189 = vector.multi_reduction <add>, %188, %cst_14 [1] : vector<1x8xf32> to vector<1xf32>
    %190 = vector.shape_cast %189 : vector<1xf32> to vector<1x1xf32>
    %cst_15 = arith.constant 4.000000e+00 : f32
    %191 = vector.broadcast %cst_15 : f32 to vector<1x1xf32>
    %192 = arith.cmpf ogt, %190, %191 : vector<1x1xf32>
    %193 = arith.extui %192 : vector<1x1xi1> to vector<1x1xi32>
    %194 = arith.sitofp %193 : vector<1x1xi32> to vector<1x1xf32>
    %195 = vector.broadcast %194 : vector<1x1xf32> to vector<1x8xf32>
    %196 = arith.mulf %195, %188 : vector<1x8xf32>
    %cst_16 = arith.constant 1.000000e+00 : f32
    %197 = vector.broadcast %cst_16 : f32 to vector<1x1xf32>
    %198 = arith.subf %197, %194 : vector<1x1xf32>
    %cst_17 = arith.constant 1.000000e+00 : f32
    %199 = vector.broadcast %cst_17 : f32 to vector<1x8xf32>
    %200 = arith.subf %199, %188 : vector<1x8xf32>
    %201 = vector.broadcast %198 : vector<1x1xf32> to vector<1x8xf32>
    %202 = arith.mulf %201, %200 : vector<1x8xf32>
    %203 = arith.addf %196, %202 : vector<1x8xf32>
    %cst_18 = arith.constant dense<0.000000e+00> : vector<1xf32>
    %204 = vector.multi_reduction <add>, %203, %cst_18 [1] : vector<1x8xf32> to vector<1xf32>
    %205 = vector.shape_cast %204 : vector<1xf32> to vector<1x1xf32>
    %206 = vector.broadcast %205 : vector<1x1xf32> to vector<1x8xf32>
    %207 = arith.divf %203, %206 : vector<1x8xf32>
    %208 = vector.broadcast %207 : vector<1x8xf32> to vector<32x8xf32>
    %209 = arith.mulf %0, %208 : vector<32x8xf32>
    %cst_19 = arith.constant dense<0.000000e+00> : vector<32xf32>
    %210 = vector.multi_reduction <add>, %209, %cst_19 [1] : vector<32x8xf32> to vector<32xf32>
    %211 = vector.shape_cast %210 : vector<32xf32> to vector<32x1xf32>
    %c0_20 = arith.constant 0 : index
    %c0_21 = arith.constant 0 : index
    %212 = vector.load %arg2[%c0_20, %c0_21] : memref<32x1xf32, #tpu.memory_space<vmem>>, vector<32x1xf32>
    tpu.vector_store %arg2[%c0_20, %c0_21], %211 {strides = array<i32>} : memref<32x1xf32, #tpu.memory_space<vmem>>, vector<32x1xf32>,
    return
  }
  func.func @transform_0(%arg0: i32) -> (i32, i32) {
    %c0_i32 = arith.constant 0 : i32
    %c0_i32_0 = arith.constant 0 : i32
    %c0_i32_1 = arith.constant 0 : i32
    return %c0_i32, %c0_i32_0 : i32, i32
  }
  func.func @transform_1(%arg0: i32) -> (i32, i32) {
    %c0_i32 = arith.constant 0 : i32
    %c0_i32_0 = arith.constant 0 : i32
    %c0_i32_1 = arith.constant 0 : i32
    return %c0_i32, %c0_i32_0 : i32, i32
  }
}

</mosaic_0001>

<bundles_post_ra>
// kernel: net_forward.1
= control target key start
LH: loop header
LB: loop body
LE: loop exit
PB: predicated region body
PF: predicated region fallthrough
CT: control target
= control target key end

     0   :  { %vm16_vm0 = vcmask 64512   ;;  %v438_v3 = vmov 0.0   ;;  %vm439_vm1 = vmmov 0   ;;  %vm68_vm2 = vcmask 261120   ;;  %s591_s0 = inlined_call_operand.vmem [shape: f32[32,8], index: 0, kind: input, shape index: {}]   ;;  %s592_s1 = inlined_call_operand.vmem [shape: f32[32,1], index: 1, kind: output, shape index: {}]  }
   0x1   :  { %v461_v0 = vld [vmem:[%s591_s0] sm:$0xff]  ;;  %v466_v1 = vld [vmem:[%s591_s0 + $0x8] sm:$0xff]  ;;  %v471_v2 = vld [vmem:[%s591_s0 + $0x10] sm:$0xff]  ;;  %404 = vmatprep.subr.mxu0 %v438_v3  ;;  %412 = vmatprep.mubr.msk.f32.mxu0 %vm439_vm1, %v438_v3  ;;  %v440_v29 = vmov 0   ;;  %vm142_vm3 = vcmask 64519   ;;  %v441_v35 = vmov 1   ;;  %v147_v36 = vlaneseq }
   0x2   :  { %v478_v4 = vld [vmem:[%s591_s0 + $0x18] sm:$0xff]  ;;  %v12_v5 = vmul.f32 %v461_v0, %v461_v0  ;;  %v13_v6 = vmul.f32 %v466_v1, %v466_v1  ;;  %v14_v7 = vmul.f32 %v471_v2, %v471_v2  ;;  %425 = vset.pattern.permute.xlu1 %v440_v29 }
   0x3   :  { %v15_v8 = vmul.f32 %v478_v4, %v478_v4  ;;  %v509_v37 = vand.u32 127, %v147_v36 }
   0x4   :  { %v17_v9 = vsel %vm16_vm0, %v12_v5, 0.0  ;;  %v18_v10 = vsel %vm16_vm0, %v13_v6, 0.0  ;;  %v20_v11 = vsel %vm16_vm0, %v14_v7, 0.0 }
   0x5   :  { %v19_v12 = vadd.f32 %v18_v10, %v17_v9  ;;  %v22_v13 = vsel %vm16_vm0, %v15_v8, 0.0  ;;  %vm156_vm5 = vcmp.eq.s32.totalorder %v509_v37, 0  ;;  %vm181_vm6 = vcmp.eq.s32.totalorder %v509_v37, 1 }
   0x6   :  { %vm204_vm7 = vcmp.eq.s32.totalorder %v509_v37, 2  ;;  %vm227_vm8 = vcmp.eq.s32.totalorder %v509_v37, 3  ;;  %vm250_vm9 = vcmp.eq.s32.totalorder %v509_v37, 4  ;;  %vm273_vm10 = vcmp.eq.s32.totalorder %v509_v37, 5 }
   0x7   :  { %v21_v14 = vadd.f32 %v20_v11, %v19_v12  ;;  %v382_v40 = vsel %vm156_vm5, 1.0, %v438_v3  ;;  %v519_v41 = vsel %vm181_vm6, 1.0, %v438_v3  ;;  %v522_v42 = vsel %vm204_vm7, 1.0, %v438_v3 }
   0x8   :  { %v525_v43 = vsel %vm227_vm8, 1.0, %v438_v3  ;;  %v528_v44 = vsel %vm250_vm9, 1.0, %v438_v3  ;;  %v531_v45 = vsel %vm273_vm10, 1.0, %v438_v3  ;;  %vm296_vm5 = vcmp.eq.s32.totalorder %v509_v37, 6 }
   0x9   :  { %v23_v15 = vadd.f32 %v22_v13, %v21_v14 }
   0xb   :  { %v24_v16 = vrot.slane %v23_v15, 4 }
   0xd   :  { %v25_v17 = vadd.f32 %v24_v16, %v23_v15 }
   0xf   :  { %v26_v18 = vrot.slane %v25_v17, 2 }
  0x11   :  { %v27_v19 = vadd.f32 %v26_v18, %v25_v17 }
  0x13   :  { %v28_v20 = vrot.slane %v27_v19, 1 }
  0x15   :  { %v29_v21 = vadd.f32 %v28_v20, %v27_v19 }
  0x17   :  { %v30_v22 = vadd.f32 1e-12, %v29_v21 }
  0x19   :  { %434 = vrsqrt.f32 %v30_v22 }
  0x26   :  { %v435_v23 = vpop.eup %434 }
  0x27   :  { %v32_v24 = vmul.f32 %v435_v23, %v461_v0  ;;  %v35_v25 = vmul.f32 %v435_v23, %v478_v4  ;;  %v33_v26 = vmul.f32 %v435_v23, %v466_v1  ;;  %v34_v27 = vmul.f32 %v435_v23, %v471_v2 }
  0x29   :  { %36 = vxpose.xlu0.b32.start [1/4] (short) (narrow) %v32_v24, 8  ;;  %405 = vmatpush3.msra.mxu0 %v35_v25 }
  0x2a   :  { %406 = vmatprep.subr.mxu0 %v438_v3 }
  0x2b   :  { %407 = vmatpush3.msra.mxu0 %v34_v27 }
  0x2c   :  { %408 = vmatprep.subr.mxu0 %v438_v3 }
  0x2d   :  { %37 = vxpose.xlu0.b32.cont [2/4] (short) (narrow) %v33_v26, 8  ;;  %409 = vmatpush3.msra.mxu0 %v33_v26  ;;  %v394_v26 = vsel %vm296_vm5, 1.0, %v438_v3 }
  0x2e   :  { %410 = vmatprep.subr.mxu0 %v438_v3 }
  0x2f   :  { %411 = vmatpush3.msra.mxu0 %v32_v24 }
  0x31   :  { %38 = vxpose.xlu0.b32.cont [3/4] (short) (narrow) %v34_v27, 8 }
  0x35   :  { %39 = vxpose.xlu0.b32.end [4/4] (short) (narrow) %v35_v25, 8 }
  0x5e   :  { %426 = vset.pattern.permute.xlu0 %v441_v35 }
  0xa5   :  { %v52_v28 = vpop.trf.xlu0 }
  0xa6   :  { %413 = vmatmul.mubr.msk.f32.vlgmr.msra.gmra.mxu0 %vm68_vm2, %v52_v28 }
 0x166   :  { %v499_v30 = vpop.f32.mrf.mxu0 }
 0x167   :  { %v143_v31 = vsel %vm142_vm3, %v499_v30, 0.0  ;;  %vm152_vm4 = vcmp.lt.f32.partialorder %v499_v30, 0.0 }
 0x168   :  { %144 = vadd.xlane.f32.xlu1 %v143_v31  ;;  %v414_v32 = vpop.f32.mrf.mxu0  ;;  %v505_v33 = vsel %vm152_vm4, 1.0, %v438_v3  ;;  %vm319_vm4 = vcmp.eq.s32.totalorder %v509_v37, 7 }
 0x169   :  { %v155_v34 = vmax.f32 %v505_v33, 0.0  ;;  %v396_v23 = vsel %vm319_vm4, 1.0, %v438_v3 }
 0x179   :  { %172 = vperm.xlu1 %425, %v155_v34   ;;  %v442_v34 = vmov 2  }
 0x17d   :  { %427 = vset.pattern.permute.xlu1 %v442_v34 }
 0x1f1   :  { %v145_v38 = vpop.xlane.xlu1 %144 }
 0x1f2   :  { %v146_v39 = vmul.f32 0.125, %v145_v38 }
 0x1f4   :  { %vm149_vm11 = vcmp.lt.f32.partialorder %v499_v30, %v146_v39  ;;  %v160_v46 = vrot.slane %v146_v39, 7  ;;  %v184_v47 = vrot.slane %v146_v39, 6  ;;  %v207_v48 = vrot.slane %v146_v39, 5 }
 0x1f5   :  { %v380_v49 = vsel %vm149_vm11, 1.0, %v438_v3  ;;  %v230_v50 = vrot.slane %v146_v39, 4  ;;  %v253_v51 = vrot.slane %v146_v39, 3  ;;  %v276_v52 = vrot.slane %v146_v39, 2  ;;  %v173_v15 = vpop.permute.xlu1 %172 }
 0x1f6   :  { %vm162_vm12 = vcmp.ge.f32.partialorder %v499_v30, %v160_v46  ;;  %v166_v53 = vrot.slane %v380_v49, 7  ;;  %vm186_vm13 = vcmp.ge.f32.partialorder %v499_v30, %v184_v47  ;;  %v189_v54 = vrot.slane %v380_v49, 6 }
 0x1f7   :  { %v383_v55 = vsel %vm162_vm12, 1.0, %v438_v3  ;;  %v385_v56 = vsel %vm186_vm13, 1.0, %v438_v3  ;;  %vm209_vm14 = vcmp.ge.f32.partialorder %v499_v30, %v207_v48  ;;  %v212_v57 = vrot.slane %v380_v49, 5 }
 0x1f8   :  { %v168_v58 = vmul.f32 %v383_v55, %v166_v53  ;;  %v191_v59 = vmul.f32 %v385_v56, %v189_v54  ;;  %v387_v60 = vsel %vm209_vm14, 1.0, %v438_v3  ;;  %vm232_vm15 = vcmp.ge.f32.partialorder %v499_v30, %v230_v50 }
 0x1f9   :  { %v214_v61 = vmul.f32 %v387_v60, %v212_v57  ;;  %v389_v62 = vsel %vm232_vm15, 1.0, %v438_v3  ;;  %v235_v63 = vrot.slane %v380_v49, 4  ;;  %vm255_vm1 = vcmp.ge.f32.partialorder %v499_v30, %v253_v51 }
 0x1fa   :  { %v169_v5 = vmax.f32 %v382_v40, %v168_v58  ;;  %v192_v6 = vmax.f32 %v519_v41, %v191_v59  ;;  %v391_v7 = vsel %vm255_vm1, 1.0, %v438_v3  ;;  %v258_v8 = vrot.slane %v380_v49, 3 }
 0x1fb   :  { %v215_v9 = vmax.f32 %v522_v42, %v214_v61  ;;  %v237_v10 = vmul.f32 %v389_v62, %v235_v63  ;;  %vm278_vm2 = vcmp.ge.f32.partialorder %v499_v30, %v276_v52  ;;  %v281_v11 = vrot.slane %v380_v49, 2 }
 0x1fc   :  { %v176_v12 = vrot.slane %v169_v5, 1  ;;  %v260_v13 = vmul.f32 %v391_v7, %v258_v8  ;;  %v393_v14 = vsel %vm278_vm2, 1.0, %v438_v3  ;;  %v299_v18 = vrot.slane %v146_v39, 1 }
 0x1fd   :  { %v238_v16 = vmax.f32 %v525_v43, %v237_v10  ;;  %v283_v17 = vmul.f32 %v393_v14, %v281_v11  ;;  %v304_v21 = vrot.slane %v380_v49, 1  ;;  %vm322_vm6 = vcmp.ge.f32.partialorder %v499_v30, %v146_v39 }
 0x1fe   :  { %v178_v19 = vmul.f32 %v176_v12, %v173_v15  ;;  %v261_v20 = vmax.f32 %v528_v44, %v260_v13  ;;  %vm301_vm7 = vcmp.ge.f32.partialorder %v499_v30, %v299_v18  ;;  %v397_v24 = vsel %vm322_vm6, 1.0, %v438_v3 }
 0x1ff   :  { %v284_v22 = vmax.f32 %v531_v45, %v283_v17  ;;  %v395_v27 = vsel %vm301_vm7, 1.0, %v438_v3  ;;  %v325_v28 = vmul.f32 %v397_v24, %v380_v49  ;;  %v199_v37 = vrot.slane %v192_v6, 2 }
 0x200   :  { %v179_v25 = vmax.f32 %v178_v19, 0.0  ;;  %v306_v29 = vmul.f32 %v395_v27, %v304_v21  ;;  %v443_v41 = vmov 3   ;;  %v222_v42 = vrot.slane %v215_v9, 3 }
 0x201   :  { %v326_v32 = vmax.f32 %v396_v23, %v325_v28  ;;  %v444_v47 = vmov 4   ;;  %v245_v48 = vrot.slane %v238_v16, 4  ;;  %v445_v53 = vmov 5  }
 0x202   :  { %v180_v31 = vmax.f32 %v505_v33, %v179_v25  ;;  %v307_v35 = vmax.f32 %v394_v26, %v306_v29  ;;  %v268_v54 = vrot.slane %v261_v20, 5  ;;  %v446_v59 = vmov 6  }
 0x203   :  { %v291_v60 = vrot.slane %v284_v22, 6  ;;  %v447_v6 = vmov 7   ;;  %v351_v24 = vshrl.u32 %v147_v36, 7 }
 0x204   :  { %195 = vperm.xlu0 %426, %v180_v31   ;;  %v314_v7 = vrot.slane %v307_v35, 7 }
 0x208   :  { %433 = vset.pattern.permute.xlu0 %v447_v6 }
 0x27f   :  { %v196_v30 = vpop.permute.xlu0 %195 }
 0x280   :  { %v201_v38 = vmul.f32 %v199_v37, %v196_v30 }
 0x282   :  { %v202_v39 = vmax.f32 %v179_v25, %v201_v38  ;;  %v352_v25 = vsub.s32 7, %v351_v24 }
 0x284   :  { %v203_v40 = vmax.f32 %v505_v33, %v202_v39 }
 0x286   :  { %218 = vperm.xlu1 %427, %v203_v40  }
 0x28a   :  { %428 = vset.pattern.permute.xlu1 %v443_v41 }
 0x301   :  { %v219_v43 = vpop.permute.xlu1 %218 }
 0x302   :  { %v224_v44 = vmul.f32 %v222_v42, %v219_v43 }
 0x304   :  { %v225_v45 = vmax.f32 %v202_v39, %v224_v44 }
 0x306   :  { %v226_v46 = vmax.f32 %v505_v33, %v225_v45 }
 0x308   :  { %241 = vperm.xlu1 %428, %v226_v46  }
 0x30c   :  { %429 = vset.pattern.permute.xlu1 %v444_v47 }
 0x383   :  { %v242_v49 = vpop.permute.xlu1 %241 }
 0x384   :  { %v247_v50 = vmul.f32 %v245_v48, %v242_v49 }
 0x386   :  { %v248_v51 = vmax.f32 %v225_v45, %v247_v50 }
 0x388   :  { %v249_v52 = vmax.f32 %v505_v33, %v248_v51 }
 0x38a   :  { %264 = vperm.xlu1 %429, %v249_v52  }
 0x38e   :  { %430 = vset.pattern.permute.xlu1 %v445_v53 }
 0x405   :  { %v265_v55 = vpop.permute.xlu1 %264 }
 0x406   :  { %v270_v56 = vmul.f32 %v268_v54, %v265_v55 }
 0x408   :  { %v271_v57 = vmax.f32 %v248_v51, %v270_v56 }
 0x40a   :  { %v272_v58 = vmax.f32 %v505_v33, %v271_v57 }
 0x40c   :  { %287 = vperm.xlu1 %430, %v272_v58  }
 0x410   :  { %431 = vset.pattern.permute.xlu1 %v446_v59 }
 0x487   :  { %v288_v61 = vpop.permute.xlu1 %287 }
 0x488   :  { %v293_v62 = vmul.f32 %v291_v60, %v288_v61 }
 0x48a   :  { %v294_v63 = vmax.f32 %v271_v57, %v293_v62 }
 0x48c   :  { %v295_v5 = vmax.f32 %v505_v33, %v294_v63 }
 0x48e   :  { %310 = vperm.xlu1 %431, %v295_v5  }
 0x492   :  { %432 = vset.pattern.permute.xlu1 %v447_v6 }
 0x509   :  { %v311_v8 = vpop.permute.xlu1 %310 }
 0x50a   :  { %v316_v9 = vmul.f32 %v314_v7, %v311_v8 }
 0x50c   :  { %v317_v10 = vmax.f32 %v294_v63, %v316_v9 }
 0x50e   :  { %v318_v11 = vmax.f32 %v505_v33, %v317_v10 }
 0x510   :  { %329 = vperm.xlu1 %432, %v318_v11  }
 0x58b   :  { %v330_v12 = vpop.permute.xlu1 %329 }
 0x58c   :  { %v332_v13 = vmul.f32 %v330_v12, %v326_v32 }
 0x58e   :  { %v333_v14 = vmax.f32 %v317_v10, %v332_v13 }
 0x590   :  { %v334_v15 = vsel %vm142_vm3, %v333_v14, 0.0  ;;  %v342_v19 = vsub.f32 1.0, %v333_v14 }
 0x591   :  { %335 = vadd.xlane.f32.xlu1 %v334_v15 }
 0x61a   :  { %v336_v16 = vpop.xlane.xlu1 %335 }
 0x61b   :  { %vm337_vm8 = vcmp.gt.f32.partialorder %v336_v16, 4.0 }
 0x61c   :  { %v398_v17 = vsel %vm337_vm8, 1.0, %v438_v3 }
 0x61d   :  { %v341_v18 = vsub.f32 1.0, %v398_v17  ;;  %v340_v20 = vmul.f32 %v398_v17, %v333_v14 }
 0x61f   :  { %v343_v21 = vmul.f32 %v342_v19, %v341_v18 }
 0x621   :  { %v344_v22 = vadd.f32 %v343_v21, %v340_v20 }
 0x623   :  { %v345_v23 = vsel %vm142_vm3, %v344_v22, 0.0  ;;  %vm370_vm3 = vcmask 7168  }
 0x624   :  { %346 = vadd.xlane.f32.xlu0 %v345_v23 }
 0x6ad   :  { %v347_v33 = vpop.xlane.xlu0 %346 }
 0x6ae   :  { %436 = vrcp.f32 %v347_v33 }
 0x6bb   :  { %v437_v26 = vpop.eup %436 }
 0x6bc   :  { %v349_v27 = vmul.f32 %v437_v26, %v344_v22 }
 0x6be   :  { %v353_v28 = vrot.slane %v349_v27, %v352_v25 }
 0x6c0   :  { %v356_v29 = vmul.f32 %v353_v28, %v471_v2  ;;  %v354_v3 = vmul.f32 %v353_v28, %v461_v0  ;;  %v355_v34 = vmul.f32 %v353_v28, %v466_v1  ;;  %v357_v36 = vmul.f32 %v353_v28, %v478_v4 }
 0x6c2   :  { %v364_v31 = vsel %vm16_vm0, %v356_v29, 0.0  ;;  %v358_v32 = vsel %vm16_vm0, %v354_v3, 0.0  ;;  %v361_v35 = vsel %vm16_vm0, %v355_v34, 0.0  ;;  %v367_v37 = vsel %vm16_vm0, %v357_v36, 0.0 }
 0x6c3   :  { %365 = vadd.xlane.f32.xlu0 %v364_v31  ;;  %359 = vadd.xlane.f32.xlu1 %v358_v32 }
 0x6c7   :  { %362 = vadd.xlane.f32.xlu1 %v361_v35 }
 0x6cb   :  { %368 = vadd.xlane.f32.xlu1 %v367_v37 }
 0x74c   :  { %v366_v2 = vpop.xlane.xlu0 %365  ;;  %v360_v30 = vpop.xlane.xlu1 %359 }
 0x74d   :  { %373 = vst.msk [vmem:[%s592_s1 + $0x10] sm:$0xff] %vm370_vm3, %v366_v2  ;;  %371 = vst.msk [vmem:[%s592_s1] sm:$0xff] %vm370_vm3, %v360_v30 }
 0x750   :  { %v363_v0 = vpop.xlane.xlu1 %362 }
 0x751   :  { %372 = vst.msk [vmem:[%s592_s1 + $0x8] sm:$0xff] %vm370_vm3, %v363_v0 }
 0x754   :  { %v369_v1 = vpop.xlane.xlu1 %368 }
 0x755   :  { %374 = vst.msk [vmem:[%s592_s1 + $0x18] sm:$0xff] %vm370_vm3, %v369_v1 }

</bundles_post_ra>
